<compile_context>
chip_gen: v7x
topology: tpu7x:2x2x1
jax: 0.10.0
libtpu: 0.0.40
codegen_flags: <defaults>
</compile_context>

<pallas_src>
import numpy as np

import jax
import jax.numpy as jnp
from jax import lax
from jax.experimental import pallas as pl
from jax.experimental.pallas import tpu as pltpu

LANES = 128
NUM_SLICES = 2                        # leading "parallel" grid axis (v7x: 1 per TC)
MAX_BLOCK_ROWS = 8192                 # 4 MiB f32 per input per pipeline buffer
TARGET_STEP_BYTES = 8 * 1024 * 1024   # fresh x+q bytes streamed per grid step
VMEM_LIMIT_BYTES = 48 * 1024 * 1024   # explicit scoped-VMEM limit (v5e default is 16 MiB)

# Statistic slot layout inside the per-slice (_NSTAT*8, 128) accumulator block.
_MIN_X, _MAX_X, _MIN_Q, _MAX_Q = 0, 1, 2, 3
_SUM_E, _SUM_Q, _SUM_EE, _SUM_QQ, _SUM_EQ = 4, 5, 6, 7, 8
_NSTAT = 9


def _slab_dtype(dtype):
    dtype = jnp.dtype(dtype)
    if dtype in (jnp.dtype(jnp.float32), jnp.dtype(jnp.bfloat16)):
        return dtype
    return jnp.dtype(jnp.float32)


def _sublane_align(dtype):
    return {4: 8, 2: 16, 1: 32}[jnp.dtype(dtype).itemsize]


def _plan(numel, x_dt, q_dt):
    """Pick (num_slices, steps_per_slice, block_rows, slab_rows)."""
    rows = -(-numel // LANES)
    align = max(_sublane_align(x_dt), _sublane_align(q_dt))
    bytes_per_row = LANES * (x_dt.itemsize + q_dt.itemsize)
    cap = (TARGET_STEP_BYTES // bytes_per_row) // align * align
    cap = max(align, min(MAX_BLOCK_ROWS, cap))
    num_slices = NUM_SLICES if rows >= NUM_SLICES * align else 1
    per_slice = -(-rows // num_slices)
    steps = -(-per_slice // cap)
    per_step = -(-per_slice // steps)
    block_rows = -(-per_step // align) * align   # adaptive: <1 block of padding
    slab_rows = max(rows, block_rows)            # tiny tensors: pad up to one block
    return num_slices, steps, block_rows, slab_rows


def _as_slab(t, dtype, slab_rows):
    """Flat lane-dense (slab_rows, 128) view.  Zero-copy when numel % 128 == 0
    and the tensor is not tiny; otherwise a minimal lane pad (masked in-kernel)."""
    flat = jnp.ravel(jnp.asarray(t))
    if flat.dtype != dtype:
        flat = flat.astype(dtype)
    pad = slab_rows * LANES - flat.shape[0]
    if pad:
        flat = jnp.pad(flat, (0, pad))
    return flat.reshape(slab_rows, LANES)


# ----------------------------------------------------------------------------
# Fused streaming kernel: min/max of x and q + moments of e = x - q and q.
# Output block (per slice): (_NSTAT*8, 128) f32 of per-lane partial accumulators.
# ----------------------------------------------------------------------------
def _make_stats_kernel(numel, block_rows, steps_per_slice, needs_mask):
    groups = block_rows // 8
    block_elems = block_rows * LANES

    def fold(a, op):
        # (block_rows,128) -> (8,128): combines vregs in matching lane/sublane
        # positions -> pure VPU, no cross-lane XLU traffic.
        return op(a.reshape(groups, 8, LANES), axis=0)

    def kernel(x_ref, q_ref, out_ref):
        slice_id = pl.program_id(0)
        step = pl.program_id(1)

        @pl.when(step == 0)
        def _init():
            pinf = jnp.full((8, LANES), jnp.inf, dtype=jnp.float32)
            zero = jnp.zeros((8, LANES), dtype=jnp.float32)
            out_ref[pl.ds(_MIN_X * 8, 8), :] = pinf
            out_ref[pl.ds(_MAX_X * 8, 8), :] = -pinf
            out_ref[pl.ds(_MIN_Q * 8, 8), :] = pinf
            out_ref[pl.ds(_MAX_Q * 8, 8), :] = -pinf
            for s in (_SUM_E, _SUM_Q, _SUM_EE, _SUM_QQ, _SUM_EQ):
                out_ref[pl.ds(s * 8, 8), :] = zero

        x = x_ref[...].astype(jnp.float32)
        q = q_ref[...].astype(jnp.float32)

        def acc(slot, partial, combine):
            cur = out_ref[pl.ds(slot * 8, 8), :]
            out_ref[pl.ds(slot * 8, 8), :] = combine(cur, partial)

        def update(xs, qs, x_lo, x_hi, q_lo, q_hi):
            acc(_MIN_X, fold(x_lo, jnp.min), jnp.minimum)
            acc(_MAX_X, fold(x_hi, jnp.max), jnp.maximum)
            acc(_MIN_Q, fold(q_lo, jnp.min), jnp.minimum)
            acc(_MAX_Q, fold(q_hi, jnp.max), jnp.maximum)
            e = xs - qs
            acc(_SUM_E, fold(e, jnp.sum), jnp.add)
            acc(_SUM_Q, fold(qs, jnp.sum), jnp.add)
            acc(_SUM_EE, fold(e * e, jnp.sum), jnp.add)
            acc(_SUM_QQ, fold(qs * qs, jnp.sum), jnp.add)
            acc(_SUM_EQ, fold(e * qs, jnp.sum), jnp.add)

        if not needs_mask:
            # Fully covered grid: every block is dense -> no mask work at all.
            update(x, q, x, x, q, q)
        else:
            block_start = (slice_id * steps_per_slice + step) * block_elems
            is_ragged = block_start + block_elems > numel

            @pl.when(block_start + block_elems <= numel)
            def _fast():
                update(x, q, x, x, q, q)

            @pl.when(is_ragged)
            def _masked():
                # Runs on (at most) one block of the whole grid.
                rem = numel - block_start
                rows_i = lax.broadcasted_iota(jnp.int32, (block_rows, LANES), 0)
                lanes_i = lax.broadcasted_iota(jnp.int32, (block_rows, LANES), 1)
                valid = rows_i * LANES + lanes_i < rem
                pinf = jnp.float32(jnp.inf)
                update(jnp.where(valid, x, 0.0),
                       jnp.where(valid, q, 0.0),
                       jnp.where(valid, x, pinf),
                       jnp.where(valid, x, -pinf),
                       jnp.where(valid, q, pinf),
                       jnp.where(valid, q, -pinf))

    return kernel


def _collect_moments(x2d, q2d, numel, num_slices, steps, block_rows):
    coverage = num_slices * steps * block_rows * LANES
    needs_mask = coverage != numel
    kernel = _make_stats_kernel(numel, block_rows, steps, needs_mask)

    in_map = lambda i, k: (i * steps + k, 0)
    bytes_accessed = (int(x2d.size) * x2d.dtype.itemsize
                      + int(q2d.size) * q2d.dtype.itemsize
                      + num_slices * _NSTAT * 8 * LANES * 4)

    return pl.pallas_call(
        kernel,
        out_shape=jax.ShapeDtypeStruct((num_slices * _NSTAT * 8, LANES),
                                       jnp.float32),
        grid=(num_slices, steps),
        in_specs=[
            pl.BlockSpec((block_rows, LANES), in_map),
            pl.BlockSpec((block_rows, LANES), in_map),
        ],
        out_specs=pl.BlockSpec((_NSTAT * 8, LANES), lambda i, k: (i, 0)),
        compiler_params=pltpu.CompilerParams(
            dimension_semantics=("parallel", "arbitrary"),
            vmem_limit_bytes=VMEM_LIMIT_BYTES),
        cost_estimate=pl.CostEstimate(
            flops=13 * int(x2d.size),
            transcendentals=0,
            bytes_accessed=int(bytes_accessed)),
    )(x2d, q2d)


class BaseQuantizerStats:
    """JAX/Pallas port of BaseQuantizer.record_stats numerics (no file I/O)."""

    def __init__(self, op_name):
        self.op_name = op_name
        # TODO(synk): stats.csv file writing (side-effecting host I/O) is not ported.

    # TODO(synk): forward()/configure()/find_params()/fake_quantize() are
    # abstract (raise NotImplementedError) in the PyTorch module; only the
    # concrete record_stats() numerics are implemented here.
    def record_stats(self, x, qdq_x, *, qtype="INT", qformat="INT4",
                     group_size=128, zero_point=False):
        x = jnp.asarray(x)
        qdq_x = jnp.asarray(qdq_x)
        numel = int(x.size)

        x_dt = _slab_dtype(x.dtype)
        q_dt = _slab_dtype(qdq_x.dtype)
        num_slices, steps, block_rows, slab_rows = _plan(numel, x_dt, q_dt)

        x2d = _as_slab(x, x_dt, slab_rows)
        q2d = _as_slab(qdq_x, q_dt, slab_rows)

        # --- Pallas hot path: fused single-pass min/max + error moments ---
        out = _collect_moments(x2d, q2d, numel, num_slices, steps, block_rows)

        # On-device final fold of the tiny (num_slices, 9, 8, 128) partial block
        # so only 9 scalars cross device-to-host.
        acc = out.reshape(num_slices, _NSTAT, 8, LANES)
        stats_vec = jnp.stack([
            acc[:, _MIN_X].min(), acc[:, _MAX_X].max(),
            acc[:, _MIN_Q].min(), acc[:, _MAX_Q].max(),
            acc[:, _SUM_E].sum(), acc[:, _SUM_Q].sum(),
            acc[:, _SUM_EE].sum(), acc[:, _SUM_QQ].sum(),
            acc[:, _SUM_EQ].sum(),
        ])

        # PC99: top ~1% via top_k directly on the original array (no f32 copy).
        k = round(0.99 * (numel - 1))
        m = numel - k
        top_vals, _ = lax.top_k(jnp.ravel(x), m)
        pc99 = top_vals[m - 1]

        svec_host, pc99_host = jax.device_get((stats_vec, pc99))
        svec = np.asarray(svec_host, dtype=np.float64)
        xmin, xmax, qmin, qmax, se, sq, see, sqq, seq = [float(v) for v in svec]

        # SQNR from error moments:  d = a*x - b*q + c = a*e + g*q + c  with
        # a = 1/(xmax-xmin), b = 1/(qmax-qmin), g = a-b, c = -a*xmin + b*qmin.
        #   sum(d^2) = a^2*See + g^2*Sqq + n*c^2 + 2ag*Seq + 2ac*Se + 2gc*Sq
        # The dominant term a^2*See is the (small) quantization error itself, so
        # there is no catastrophic cancellation even for high-SQNR tensors.
        # Constant tensors (zero range) produce nan, matching torch's 0/0.
        with np.errstate(divide="ignore", invalid="ignore"):
            a = 1.0 / (xmax - xmin)
            b = 1.0 / (qmax - qmin)
            g = a - b
            c = -xmin * a + qmin * b
            ssq = (a * a * see + g * g * sqq + numel * c * c
                   + 2.0 * a * g * seq + 2.0 * a * c * se + 2.0 * g * c * sq)
            if np.isfinite(ssq):
                ssq = max(ssq, 0.0)
            mse = ssq / numel
            sqnr = -10.0 * np.log10(mse + 1e-10)

        clip_err = xmax - qmax

        # BPV bookkeeping (pure scalar Python, matches the PyTorch branches).
        if qtype == "DUMMY":
            bpv = 16.0
        elif qtype in ("INT", "FP", "MX"):
            bpv_scales = 16.0 / group_size
            bpv_zeros = 16.0 / group_size if zero_point else 0.0
            if qtype == "MX":
                bpv_elem = 4.0 if qformat in ("INT4", "FP4_E2M1") else 8.0
            elif qtype == "INT":
                bpv_elem = 4.0 if qformat == "INT4" else 8.0
            else:
                bpv_elem = 4.0 if qformat == "FP4_E2M1" else 8.0
            bpv = bpv_elem + bpv_scales + bpv_zeros
        elif qtype == "NV":
            bpv_scales = 16.0 / numel + 8.0 / group_size
            bpv_zeros = 16.0 / group_size if zero_point else 0.0
            bpv = 4.0 + bpv_scales + bpv_zeros
        else:
            raise ValueError(qtype)

        return {
            "Op Name": self.op_name,
            "PC99%": float(pc99_host),
            "Max": xmax,
            "QDQ(Max)": qmax,
            "SQNR": float(sqnr),
            "ClipError": clip_err,
            "Elem": numel,
            "BPV": bpv,
        }


def _reference_stats(x, qdq_x):
    """Pure-JAX reference of the PyTorch formulas (for validation)."""
    xf = jnp.asarray(x).reshape(-1).astype(jnp.float32)
    qf = jnp.asarray(qdq_x).reshape(-1).astype(jnp.float32)
    xn = (xf - xf.min()) / (xf.max() - xf.min())
    qn = (qf - qf.min()) / (qf.max() - qf.min())
    sqnr = -10.0 * jnp.log10(jnp.mean((xn - qn) ** 2) + 1e-10)
    k = round(0.99 * (xf.shape[0] - 1))
    pc99 = jnp.sort(xf)[k]
    return xf.max(), qf.max(), sqnr, pc99


if __name__ == "__main__":
    key = jax.random.PRNGKey(0)
    kx, k2, k3 = jax.random.split(key, 3)

    quantizer = BaseQuantizerStats(op_name="model.layers.0.mlp.down_proj")
    scale = 0.25

    # Case 1: NCHW activation, 2*4*16*16 = 2048 elements.  Lane-aligned and
    # block-aligned -> zero-copy slab, unmasked fast path on every block.
    x = jax.random.normal(kx, (2, 4, 16, 16), dtype=jnp.float32)
    qdq_x = jnp.clip(jnp.round(x / scale), -8, 7) * scale
    stats = quantizer.record_stats(x, qdq_x, qtype="INT", qformat="INT4",
                                   group_size=128, zero_point=False)
    max_ref, qmax_ref, sqnr_ref, pc99_ref = _reference_stats(x, qdq_x)
    assert jnp.allclose(stats["Max"], max_ref, rtol=1e-6)
    assert jnp.allclose(stats["QDQ(Max)"], qmax_ref, rtol=1e-6)
    assert jnp.allclose(stats["SQNR"], sqnr_ref, rtol=1e-4)
    assert jnp.allclose(stats["PC99%"], pc99_ref, rtol=1e-6)
    assert stats["Elem"] == 2048

    # Case 2: odd-sized tensor (105 elements) -> minimal lane pad + masked block.
    x2 = jax.random.normal(k2, (3, 5, 7), dtype=jnp.float32)
    qdq_x2 = jnp.clip(jnp.round(x2 / scale), -8, 7) * scale
    stats2 = quantizer.record_stats(x2, qdq_x2, qtype="MX", qformat="FP4_E2M1",
                                    group_size=32, zero_point=True)
    max2, qmax2, sqnr2, pc99_2 = _reference_stats(x2, qdq_x2)
    assert jnp.allclose(stats2["Max"], max2, rtol=1e-6)
    assert jnp.allclose(stats2["QDQ(Max)"], qmax2, rtol=1e-6)
    assert jnp.allclose(stats2["SQNR"], sqnr2, rtol=1e-4)
    assert jnp.allclose(stats2["PC99%"], pc99_2, rtol=1e-6)
    assert stats2["Elem"] == 105

    # Case 3: bf16, lane-aligned but not block-aligned (5*8*128 = 5120 elements)
    # -> zero-copy slab (no jnp.pad), 2 parallel slices, partial-block DMA on the
    # last block with the pl.when-gated mask.
    x3 = jax.random.normal(k3, (5, 8, 128), dtype=jnp.bfloat16)
    qdq_x3 = jnp.clip(jnp.round(x3 / scale), -8, 7) * scale
    stats3 = quantizer.record_stats(x3, qdq_x3, qtype="NV", qformat="FP4_E2M1",
                                    group_size=16, zero_point=False)
    max3, qmax3, sqnr3, pc99_3 = _reference_stats(x3, qdq_x3)
    assert jnp.allclose(stats3["Max"], max3, rtol=1e-6)
    assert jnp.allclose(stats3["QDQ(Max)"], qmax3, rtol=1e-6)
    assert jnp.allclose(stats3["SQNR"], sqnr3, rtol=1e-4)
    assert jnp.allclose(stats3["PC99%"], pc99_3, rtol=1e-6)
    assert stats3["Elem"] == 5120

    print("KERNEL_OK")
</pallas_src>

<mosaic_0001>
module attributes {stable_mosaic.version = 11 : i64} {
  func.func @kernel(%arg0: i32, %arg1: i32, %arg2: memref<8x128xf32, #tpu.memory_space<vmem>>, %arg3: memref<8x128xf32, #tpu.memory_space<vmem>>, %arg4: memref<72x128xf32, #tpu.memory_space<vmem>>) attributes {dimension_semantics = [#tpu.dimension_semantics<parallel>, #tpu.dimension_semantics<arbitrary>], iteration_bounds = array<i64: 2, 1>, scalar_prefetch = 0 : i64, scratch_operands = 0 : i64, tpu.core_type = #tpu.core_type<tc>, window_params = [{transform_indices = @transform_0, window_bounds = array<i64: 8, 128>}, {transform_indices = @transform_1, window_bounds = array<i64: 8, 128>}, {transform_indices = @transform_2, window_bounds = array<i64: 72, 128>}]} {
    %c0_i32 = arith.constant 0 : i32
    %0 = arith.cmpi eq, %arg1, %c0_i32 : i32
    %1 = arith.extui %0 : i1 to i32
    %c0_i32_0 = arith.constant 0 : i32
    %2 = arith.cmpi ne, %1, %c0_i32_0 : i32
    scf.if %2 {
      %cst_40 = arith.constant 0x7F800000 : f32
      %54 = vector.broadcast %cst_40 : f32 to vector<8x128xf32>
      %cst_41 = arith.constant 0.000000e+00 : f32
      %55 = vector.broadcast %cst_41 : f32 to vector<8x128xf32>
      %c0_42 = arith.constant 0 : index
      %c0_43 = arith.constant 0 : index
      %56 = vector.load %arg4[%c0_42, %c0_43] : memref<72x128xf32, #tpu.memory_space<vmem>>, vector<8x128xf32>
      tpu.vector_store %arg4[%c0_42, %c0_43], %54 {strides = array<i32>} : memref<72x128xf32, #tpu.memory_space<vmem>>, vector<8x128xf32>,
      %cst_44 = arith.constant 0.000000e+00 : f32
      %57 = vector.broadcast %cst_44 : f32 to vector<8x128xf32>
      %58 = arith.subf %57, %54 : vector<8x128xf32>
      %c8_45 = arith.constant 8 : index
      %c0_46 = arith.constant 0 : index
      %59 = vector.load %arg4[%c8_45, %c0_46] : memref<72x128xf32, #tpu.memory_space<vmem>>, vector<8x128xf32>
      tpu.vector_store %arg4[%c8_45, %c0_46], %58 {strides = array<i32>} : memref<72x128xf32, #tpu.memory_space<vmem>>, vector<8x128xf32>,
      %c16_47 = arith.constant 16 : index
      %c0_48 = arith.constant 0 : index
      %60 = vector.load %arg4[%c16_47, %c0_48] : memref<72x128xf32, #tpu.memory_space<vmem>>, vector<8x128xf32>
      tpu.vector_store %arg4[%c16_47, %c0_48], %54 {strides = array<i32>} : memref<72x128xf32, #tpu.memory_space<vmem>>, vector<8x128xf32>,
      %cst_49 = arith.constant 0.000000e+00 : f32
      %61 = vector.broadcast %cst_49 : f32 to vector<8x128xf32>
      %62 = arith.subf %61, %54 : vector<8x128xf32>
      %c24_50 = arith.constant 24 : index
      %c0_51 = arith.constant 0 : index
      %63 = vector.load %arg4[%c24_50, %c0_51] : memref<72x128xf32, #tpu.memory_space<vmem>>, vector<8x128xf32>
      tpu.vector_store %arg4[%c24_50, %c0_51], %62 {strides = array<i32>} : memref<72x128xf32, #tpu.memory_space<vmem>>, vector<8x128xf32>,
      %c32_52 = arith.constant 32 : index
      %c0_53 = arith.constant 0 : index
      %64 = vector.load %arg4[%c32_52, %c0_53] : memref<72x128xf32, #tpu.memory_space<vmem>>, vector<8x128xf32>
      tpu.vector_store %arg4[%c32_52, %c0_53], %55 {strides = array<i32>} : memref<72x128xf32, #tpu.memory_space<vmem>>, vector<8x128xf32>,
      %c40_54 = arith.constant 40 : index
      %c0_55 = arith.constant 0 : index
      %65 = vector.load %arg4[%c40_54, %c0_55] : memref<72x128xf32, #tpu.memory_space<vmem>>, vector<8x128xf32>
      tpu.vector_store %arg4[%c40_54, %c0_55], %55 {strides = array<i32>} : memref<72x128xf32, #tpu.memory_space<vmem>>, vector<8x128xf32>,
      %c48_56 = arith.constant 48 : index
      %c0_57 = arith.constant 0 : index
      %66 = vector.load %arg4[%c48_56, %c0_57] : memref<72x128xf32, #tpu.memory_space<vmem>>, vector<8x128xf32>
      tpu.vector_store %arg4[%c48_56, %c0_57], %55 {strides = array<i32>} : memref<72x128xf32, #tpu.memory_space<vmem>>, vector<8x128xf32>,
      %c56_58 = arith.constant 56 : index
      %c0_59 = arith.constant 0 : index
      %67 = vector.load %arg4[%c56_58, %c0_59] : memref<72x128xf32, #tpu.memory_space<vmem>>, vector<8x128xf32>
      tpu.vector_store %arg4[%c56_58, %c0_59], %55 {strides = array<i32>} : memref<72x128xf32, #tpu.memory_space<vmem>>, vector<8x128xf32>,
      %c64_60 = arith.constant 64 : index
      %c0_61 = arith.constant 0 : index
      %68 = vector.load %arg4[%c64_60, %c0_61] : memref<72x128xf32, #tpu.memory_space<vmem>>, vector<8x128xf32>
      tpu.vector_store %arg4[%c64_60, %c0_61], %55 {strides = array<i32>} : memref<72x128xf32, #tpu.memory_space<vmem>>, vector<8x128xf32>,
    } else {
    }
    %c0 = arith.constant 0 : index
    %c0_1 = arith.constant 0 : index
    %3 = vector.load %arg2[%c0, %c0_1] : memref<8x128xf32, #tpu.memory_space<vmem>>, vector<8x128xf32>
    %c0_2 = arith.constant 0 : index
    %c0_3 = arith.constant 0 : index
    %4 = vector.load %arg3[%c0_2, %c0_3] : memref<8x128xf32, #tpu.memory_space<vmem>>, vector<8x128xf32>
    %5 = vector.shape_cast %3 : vector<8x128xf32> to vector<1x8x128xf32>
    %cst = arith.constant dense<0x7F800000> : vector<8x128xf32>
    %6 = vector.multi_reduction <minimumf>, %5, %cst [0] : vector<1x8x128xf32> to vector<8x128xf32>
    %c0_4 = arith.constant 0 : index
    %c0_5 = arith.constant 0 : index
    %7 = vector.load %arg4[%c0_4, %c0_5] : memref<72x128xf32, #tpu.memory_space<vmem>>, vector<8x128xf32>
    %8 = arith.minimumf %7, %6 : vector<8x128xf32>
    %c0_6 = arith.constant 0 : index
    %c0_7 = arith.constant 0 : index
    %9 = vector.load %arg4[%c0_6, %c0_7] : memref<72x128xf32, #tpu.memory_space<vmem>>, vector<8x128xf32>
    tpu.vector_store %arg4[%c0_6, %c0_7], %8 {strides = array<i32>} : memref<72x128xf32, #tpu.memory_space<vmem>>, vector<8x128xf32>,
    %10 = vector.shape_cast %3 : vector<8x128xf32> to vector<1x8x128xf32>
    %cst_8 = arith.constant dense<0xFF800000> : vector<8x128xf32>
    %11 = vector.multi_reduction <maximumf>, %10, %cst_8 [0] : vector<1x8x128xf32> to vector<8x128xf32>
    %c8 = arith.constant 8 : index
    %c0_9 = arith.constant 0 : index
    %12 = vector.load %arg4[%c8, %c0_9] : memref<72x128xf32, #tpu.memory_space<vmem>>, vector<8x128xf32>
    %13 = arith.maximumf %12, %11 : vector<8x128xf32>
    %c8_10 = arith.constant 8 : index
    %c0_11 = arith.constant 0 : index
    %14 = vector.load %arg4[%c8_10, %c0_11] : memref<72x128xf32, #tpu.memory_space<vmem>>, vector<8x128xf32>
    tpu.vector_store %arg4[%c8_10, %c0_11], %13 {strides = array<i32>} : memref<72x128xf32, #tpu.memory_space<vmem>>, vector<8x128xf32>,
    %15 = vector.shape_cast %4 : vector<8x128xf32> to vector<1x8x128xf32>
    %cst_12 = arith.constant dense<0x7F800000> : vector<8x128xf32>
    %16 = vector.multi_reduction <minimumf>, %15, %cst_12 [0] : vector<1x8x128xf32> to vector<8x128xf32>
    %c16 = arith.constant 16 : index
    %c0_13 = arith.constant 0 : index
    %17 = vector.load %arg4[%c16, %c0_13] : memref<72x128xf32, #tpu.memory_space<vmem>>, vector<8x128xf32>
    %18 = arith.minimumf %17, %16 : vector<8x128xf32>
    %c16_14 = arith.constant 16 : index
    %c0_15 = arith.constant 0 : index
    %19 = vector.load %arg4[%c16_14, %c0_15] : memref<72x128xf32, #tpu.memory_space<vmem>>, vector<8x128xf32>
    tpu.vector_store %arg4[%c16_14, %c0_15], %18 {strides = array<i32>} : memref<72x128xf32, #tpu.memory_space<vmem>>, vector<8x128xf32>,
    %20 = vector.shape_cast %4 : vector<8x128xf32> to vector<1x8x128xf32>
    %cst_16 = arith.constant dense<0xFF800000> : vector<8x128xf32>
    %21 = vector.multi_reduction <maximumf>, %20, %cst_16 [0] : vector<1x8x128xf32> to vector<8x128xf32>
    %c24 = arith.constant 24 : index
    %c0_17 = arith.constant 0 : index
    %22 = vector.load %arg4[%c24, %c0_17] : memref<72x128xf32, #tpu.memory_space<vmem>>, vector<8x128xf32>
    %23 = arith.maximumf %22, %21 : vector<8x128xf32>
    %c24_18 = arith.constant 24 : index
    %c0_19 = arith.constant 0 : index
    %24 = vector.load %arg4[%c24_18, %c0_19] : memref<72x128xf32, #tpu.memory_space<vmem>>, vector<8x128xf32>
    tpu.vector_store %arg4[%c24_18, %c0_19], %23 {strides = array<i32>} : memref<72x128xf32, #tpu.memory_space<vmem>>, vector<8x128xf32>,
    %25 = arith.subf %3, %4 : vector<8x128xf32>
    %26 = vector.shape_cast %25 : vector<8x128xf32> to vector<1x8x128xf32>
    %cst_20 = arith.constant dense<0.000000e+00> : vector<8x128xf32>
    %27 = vector.multi_reduction <add>, %26, %cst_20 [0] : vector<1x8x128xf32> to vector<8x128xf32>
    %c32 = arith.constant 32 : index
    %c0_21 = arith.constant 0 : index
    %28 = vector.load %arg4[%c32, %c0_21] : memref<72x128xf32, #tpu.memory_space<vmem>>, vector<8x128xf32>
    %29 = arith.addf %28, %27 : vector<8x128xf32>
    %c32_22 = arith.constant 32 : index
    %c0_23 = arith.constant 0 : index
    %30 = vector.load %arg4[%c32_22, %c0_23] : memref<72x128xf32, #tpu.memory_space<vmem>>, vector<8x128xf32>
    tpu.vector_store %arg4[%c32_22, %c0_23], %29 {strides = array<i32>} : memref<72x128xf32, #tpu.memory_space<vmem>>, vector<8x128xf32>,
    %31 = vector.shape_cast %4 : vector<8x128xf32> to vector<1x8x128xf32>
    %cst_24 = arith.constant dense<0.000000e+00> : vector<8x128xf32>
    %32 = vector.multi_reduction <add>, %31, %cst_24 [0] : vector<1x8x128xf32> to vector<8x128xf32>
    %c40 = arith.constant 40 : index
    %c0_25 = arith.constant 0 : index
    %33 = vector.load %arg4[%c40, %c0_25] : memref<72x128xf32, #tpu.memory_space<vmem>>, vector<8x128xf32>
    %34 = arith.addf %33, %32 : vector<8x128xf32>
    %c40_26 = arith.constant 40 : index
    %c0_27 = arith.constant 0 : index
    %35 = vector.load %arg4[%c40_26, %c0_27] : memref<72x128xf32, #tpu.memory_space<vmem>>, vector<8x128xf32>
    tpu.vector_store %arg4[%c40_26, %c0_27], %34 {strides = array<i32>} : memref<72x128xf32, #tpu.memory_space<vmem>>, vector<8x128xf32>,
    %36 = arith.mulf %25, %25 : vector<8x128xf32>
    %37 = vector.shape_cast %36 : vector<8x128xf32> to vector<1x8x128xf32>
    %cst_28 = arith.constant dense<0.000000e+00> : vector<8x128xf32>
    %38 = vector.multi_reduction <add>, %37, %cst_28 [0] : vector<1x8x128xf32> to vector<8x128xf32>
    %c48 = arith.constant 48 : index
    %c0_29 = arith.constant 0 : index
    %39 = vector.load %arg4[%c48, %c0_29] : memref<72x128xf32, #tpu.memory_space<vmem>>, vector<8x128xf32>
    %40 = arith.addf %39, %38 : vector<8x128xf32>
    %c48_30 = arith.constant 48 : index
    %c0_31 = arith.constant 0 : index
    %41 = vector.load %arg4[%c48_30, %c0_31] : memref<72x128xf32, #tpu.memory_space<vmem>>, vector<8x128xf32>
    tpu.vector_store %arg4[%c48_30, %c0_31], %40 {strides = array<i32>} : memref<72x128xf32, #tpu.memory_space<vmem>>, vector<8x128xf32>,
    %42 = arith.mulf %4, %4 : vector<8x128xf32>
    %43 = vector.shape_cast %42 : vector<8x128xf32> to vector<1x8x128xf32>
    %cst_32 = arith.constant dense<0.000000e+00> : vector<8x128xf32>
    %44 = vector.multi_reduction <add>, %43, %cst_32 [0] : vector<1x8x128xf32> to vector<8x128xf32>
    %c56 = arith.constant 56 : index
    %c0_33 = arith.constant 0 : index
    %45 = vector.load %arg4[%c56, %c0_33] : memref<72x128xf32, #tpu.memory_space<vmem>>, vector<8x128xf32>
    %46 = arith.addf %45, %44 : vector<8x128xf32>
    %c56_34 = arith.constant 56 : index
    %c0_35 = arith.constant 0 : index
    %47 = vector.load %arg4[%c56_34, %c0_35] : memref<72x128xf32, #tpu.memory_space<vmem>>, vector<8x128xf32>
    tpu.vector_store %arg4[%c56_34, %c0_35], %46 {strides = array<i32>} : memref<72x128xf32, #tpu.memory_space<vmem>>, vector<8x128xf32>,
    %48 = arith.mulf %25, %4 : vector<8x128xf32>
    %49 = vector.shape_cast %48 : vector<8x128xf32> to vector<1x8x128xf32>
    %cst_36 = arith.constant dense<0.000000e+00> : vector<8x128xf32>
    %50 = vector.multi_reduction <add>, %49, %cst_36 [0] : vector<1x8x128xf32> to vector<8x128xf32>
    %c64 = arith.constant 64 : index
    %c0_37 = arith.constant 0 : index
    %51 = vector.load %arg4[%c64, %c0_37] : memref<72x128xf32, #tpu.memory_space<vmem>>, vector<8x128xf32>
    %52 = arith.addf %51, %50 : vector<8x128xf32>
    %c64_38 = arith.constant 64 : index
    %c0_39 = arith.constant 0 : index
    %53 = vector.load %arg4[%c64_38, %c0_39] : memref<72x128xf32, #tpu.memory_space<vmem>>, vector<8x128xf32>
    tpu.vector_store %arg4[%c64_38, %c0_39], %52 {strides = array<i32>} : memref<72x128xf32, #tpu.memory_space<vmem>>, vector<8x128xf32>,
    return
  }
  func.func @transform_0(%arg0: i32, %arg1: i32) -> (i32, i32) {
    %c1_i32 = arith.constant 1 : i32
    %0 = arith.muli %arg0, %c1_i32 : i32
    %1 = arith.addi %0, %arg1 : i32
    %c0_i32 = arith.constant 0 : i32
    %c0_i32_0 = arith.constant 0 : i32
    return %1, %c0_i32 : i32, i32
  }
  func.func @transform_1(%arg0: i32, %arg1: i32) -> (i32, i32) {
    %c1_i32 = arith.constant 1 : i32
    %0 = arith.muli %arg0, %c1_i32 : i32
    %1 = arith.addi %0, %arg1 : i32
    %c0_i32 = arith.constant 0 : i32
    %c0_i32_0 = arith.constant 0 : i32
    return %1, %c0_i32 : i32, i32
  }
  func.func @transform_2(%arg0: i32, %arg1: i32) -> (i32, i32) {
    %c0_i32 = arith.constant 0 : i32
    %c0_i32_0 = arith.constant 0 : i32
    return %arg0, %c0_i32 : i32, i32
  }
}

</mosaic_0001>

<bundles_post_ra>
// kernel: tpu_custom_call.1
= control target key start
LH: loop header
LB: loop body
LE: loop exit
PB: predicated region body
PF: predicated region fallthrough
CT: control target
= control target key end

     0   :  { %7 = vsyncpa [#allocation3], 0  ;;  %s867_s0 = inlined_call_operand.hbm [shape: f32[16,128], index: 0, kind: input, shape index: {}]   ;;  %s868_s1 = inlined_call_operand.hbm [shape: f32[16,128], index: 1, kind: input, shape index: {}]   ;;  %s869_s2 = inlined_call_operand.hbm [shape: f32[144,128], index: 2, kind: output, shape index: {}]  }
   0x1   :  { %9 = vsyncpa [#allocation3 + $0x1], 0 }
   0x2   :  { %10 = vsyncpa [#allocation6], 0 }
   0x3   :  { %12 = vsyncpa [#allocation6 + $0x1], 0 }
   0x4   :  { %13 = vsyncpa [#allocation4], 0 }
   0x5   :  { %15 = vsyncpa [#allocation4 + $0x1], 0  ;;  %s644_s9 = smov 0   ;;  %s646_s10 = smov 0  }
   0x6   :  { %s648_s11 = smov 0   ;;  %s650_s12 = smov 0  }
   0x7   :  { %s652_s13 = smov 0   ;;  %s654_s14 = smov 0  }
   0x8 LB: > { %s388_s15 = sadd.s32 4294967295, %s622_s14   ;;  %s389_s16 = sadd.s32 4294967294, %s622_s14   ;;  %s622_s14 = sphi %s654_s14, %s21_s14   ;;  %s618_s13 = sphi %s652_s13, %s889_s13   ;;  %s614_s12 = sphi %s650_s12, %s888_s12   ;;  %s610_s11 = sphi %s648_s11, %s887_s11   ;;  %s606_s10 = sphi %s646_s10, %s886_s10   ;;  %s602_s9 = sphi %s644_s9, %s885_s9  }
   0x9   : > { %s33_s17 = sadd.s32 1, %s618_s13  ;;  %s42_s18 = sadd.s32 1, %s610_s11 }
   0xa   : > { %p35_p0 = scmp.ge.s32.totalorder %s33_s17, 2  ;;  %p49_p1 = scmp.ne.s32.totalorder %s610_s11, %s606_s10 }
   0xb   : > { %p50_p2 = scmp.eq.s32.totalorder %s622_s14, 0  ;;  %p55_p3 = scmp.ne.s32.totalorder %s606_s10, %s602_s9 }
   0xc   : > { %s891_s17 = smov (%p35_p0, %s33_s17), 0  ;;  %p56_p5 = scmp.eq.s32.totalorder %s388_s15, 0 }
   0xd   : > { %p685_p4 = por %p50_p2, %p49_p1  ;;  %s39_s20 = ssub.s32 %s618_s13, %s891_s17 }
   0xe   : > { %p107_p6 = scmp.eq.s32.totalorder %s388_s15, 1  ;;  %p40_p7 = scmp.eq.s32.totalorder %s39_s20, 0 }
   0xf   : > { %p691_p8 = por %p56_p5, %p55_p3  ;;  %p113_p10 = scmp.eq.s32.totalorder %s389_s16, 1 }
  0x10   : > { %p695_p9 = por %p107_p6, %p49_p1  ;;  %p421_p13 = scmp.lt.s32.totalorder %s622_s14, 2 }
  0x11   : > { %s873_s21 = scalar_select %p691_p8, 1, 0 }
  0x12   : > { %s874_s22 = scalar_select %p695_p9, 1, 0 }
  0x13   : > { %s700_s23 = scalar_select %p40_p7, %s610_s11, %s42_s18  }
  0x14   : > { %p702_p11 = por %p113_p10, %p55_p3  ;;  %s709_s25 = sand.u32 1, %s610_s11  }
  0x15   : > { %s392_s26 = sshll.u32 %s709_s25, 3  ;;  %s393_s27 = sshll.u32 %s618_s13, 7 }
  0x16   : > { %s875_s24 = scalar_select %p702_p11, 1, 0 }
  0x17   : > { %s718_s30 = scalar_lea.hbm %s867_s0, %s393_s27  ;;  %s137_s3 = scalar_lea.vmem [#allocation2], %s392_s26 }
  0x18   : > { %s145_s4 = sshll.u32 %s137_s3, 4  ;;  %p726_p0 = pnand %p421_p13, %p685_p4  ;;  %s722_s4 = int_to_ptr.vmem [resolvable:$true] %s145_s4 }
  0x19   : > { %s134_s6 = scalar_lea.sflag [#allocation3], %s709_s25  ;;  %s476_s7 = scalar_lea.hbm %s718_s30, 128 }
  0x1a   : > { %p477_p3 = scmp.ne.s32.totalorder %s718_s30, %s476_s7  ;;  %p478_p5 = pneg %p726_p0 }
  0x1b   : > { %s481_s16 = scalar_lea.hbm %s867_s0, 256  ;;  %p482_p4 = scmp.lt.u32.totalorder %s718_s30, %s867_s0 }
  0x1c   : > { %p479_p6 = pnand %p478_p5, %p477_p3  ;;  %p483_p10 = scmp.lt.u32.totalorder %s481_s16, %s476_s7 }
  0x1d   : > { %p485_p12 = scmp.lt.u32.totalorder %s476_s7, %s718_s30 }
  0x1e   : > { %p480_p7 = pneg %p479_p6  ;;  %p484_p13 = por %p483_p10, %p482_p4 }
  0x20   : > { %p486_p1 = por %p485_p12, %p484_p13 }
  0x22   : > { %p487_p2 = pnand %p486_p1, %p480_p7 }
  0x24   : > { %490 = shalt.err (!%p487_p2)
}
  0x25   : > { %s491_s20 = scalar_lea.vmem %s722_s4, 128  ;;  %s624_s28 = smov [#allocation2]  }
  0x26   : > { %p492_p3 = scmp.ne.s32.totalorder %s722_s4, %s491_s20  ;;  %s496_s29 = sshll.u32 %s624_s28, 4  ;;  %s497_s29 = int_to_ptr.vmem [resolvable:$false] %s496_s29 }
  0x27   : > { %s498_s3 = scalar_lea.vmem %s497_s29, 256  ;;  %p499_p9 = scmp.lt.s32.totalorder %s722_s4, %s497_s29 }
  0x28   : > { %p494_p6 = pnand %p492_p3, %p478_p5  ;;  %p500_p4 = scmp.lt.s32.totalorder %s498_s3, %s491_s20 }
  0x2a   : > { %p495_p11 = pneg %p494_p6  ;;  %p501_p10 = por %p500_p4, %p499_p9 }
  0x2c   : > { %p502_p12 = pnand %p501_p10, %p495_p11 }
  0x2e   : > { %505 = shalt.err (!%p502_p12)
}
  0x2f   : > { %413 = dma.hbm_to_vmem [thread:$0]  (!%p726_p0), %s718_s30, 128, %s722_s4, %s134_s6  }
  0x30   : > { %p877_p1 = scmp.lt.s32.totalorder %s622_s14, 3  ;;  %p878_p2 = scmp.ge.s32.totalorder %s622_s14, 1 }
  0x31   : > { %s771_s16 = scalar_lea.hbm %s868_s1, %s393_s27  ;;  %s156_s18 = scalar_lea.vmem [#allocation5], %s392_s26 }
  0x32   : > { %p762_p7 = pnand %p878_p2, %p877_p1  ;;  %s164_s19 = sshll.u32 %s156_s18, 4  ;;  %s165_s19 = int_to_ptr.vmem [resolvable:$true] %s164_s19 }
  0x33   : > { %s153_s30 = scalar_lea.sflag [#allocation6], %s709_s25  ;;  %s506_s4 = scalar_lea.hbm %s771_s16, 128 }
  0x34   : > { %s879_s7 = scalar_select %p762_p7, 1, 0 }
  0x35   : > { %p507_p9 = scmp.ne.s32.totalorder %s771_s16, %s506_s4  ;;  %s511_s27 = scalar_lea.hbm %s868_s1, 256 }
  0x36   : > { %p512_p3 = scmp.lt.u32.totalorder %s771_s16, %s868_s1  ;;  %p513_p6 = scmp.lt.u32.totalorder %s511_s27, %s506_s4 }
  0x37   : > { %p509_p11 = pnand %p507_p9, %p478_p5  ;;  %p515_p10 = scmp.lt.u32.totalorder %s506_s4, %s771_s16 }
  0x38   : > { %p514_p4 = por %p513_p6, %p512_p3 }
  0x39   : > { %p510_p13 = pneg %p509_p11 }
  0x3a   : > { %p516_p12 = por %p515_p10, %p514_p4 }
  0x3c   : > { %p517_p1 = pnand %p516_p12, %p510_p13 }
  0x3e   : > { %520 = shalt.err (!%p517_p1)
}
  0x3f   : > { %s521_s25 = scalar_lea.vmem %s165_s19, 128  ;;  %s625_s26 = smov [#allocation5]  }
  0x40   : > { %p522_p2 = scmp.ne.s32.totalorder %s165_s19, %s521_s25  ;;  %s526_s3 = sshll.u32 %s625_s26, 4  ;;  %s527_s3 = int_to_ptr.vmem [resolvable:$false] %s526_s3 }
  0x41   : > { %s528_s8 = scalar_lea.vmem %s527_s3, 256  ;;  %p529_p8 = scmp.lt.s32.totalorder %s165_s19, %s527_s3 }
  0x42   : > { %p524_p9 = pnand %p522_p2, %p478_p5  ;;  %p530_p7 = scmp.lt.s32.totalorder %s528_s8, %s521_s25 }
  0x44   : > { %p525_p11 = pneg %p524_p9  ;;  %p531_p3 = por %p530_p7, %p529_p8 }
  0x46   : > { %p532_p6 = pnand %p531_p3, %p525_p11 }
  0x48   : > { %535 = shalt.err (!%p532_p6)
}
  0x49   : > { %416 = dma.hbm_to_vmem [thread:$0]  (!%p726_p0), %s771_s16, 128, %s165_s19, %s153_s30  }
  0x4a   : > { %p880_p13 = scmp.ne.s32.totalorder %s879_s7, 0 }
  0x4b   : > { %s798_s15 = sand.u32 (!%p880_p13), 1, %s606_s10   ;;  %p881_p5 = scmp.ne.s32.totalorder (!%p880_p13), %s873_s21, 0 }
  0x4c   : > { %173 = sbr.rel (%p880_p13) target bundleno = 113 (0x71), region = 28  ;;  %s397_s18 = sshll.u32 (!%p880_p13), %s798_s15, 3 }
  0x4d   : > { %s176_s4 = scalar_lea.sflag (!%p880_p13), [#allocation3], %s798_s15  ;;  %s179_s6 = scalar_lea.vmem (!%p880_p13), [#allocation2], %s397_s18 }
  0x53   : > { %589 = dma.done.wait (%p881_p5), %s176_s4, 128  }
  0x54   : > { %591 = vsyncadd (%p881_p5), %s176_s4, 4294967168  ;;  %s185_s5 = scalar_lea.sflag [#allocation6], %s798_s15  ;;  %s188_s16 = scalar_lea.vmem [#allocation5], %s397_s18 }
  0x55   : > { %593 = dma.done.wait (%p881_p5), %s185_s5, 128  }
  0x56   : > { %595 = vsyncadd (%p881_p5), %s185_s5, 4294967168  ;;  %s403_s7 = smul.u32 72, %s798_s15  ;;  %v230_v0 = vld [vmem:[%s179_s6] sm:$0xff]  ;;  %v231_v1 = vld [vmem:[%s188_s16] sm:$0xff]  ;;  %p882_p0 = scmp.ne.s32.totalorder %s874_s22, 0 }
  0x57   : > { %v244_v2 = vsub.f32 %v230_v0, %v231_v1  ;;  %v258_v3 = vmul.f32 %v231_v1, %v231_v1  ;;  %s402_s19 = smul.u32 1152, %s614_s12  ;;  %s269_s12 = scalar_lea.sflag [#allocation4], %s798_s15 }
  0x58   : > { %s213_s30 = scalar_lea.vmem [#allocation7], %s403_s7  ;;  %s626_s25 = smov [#allocation7]  }
  0x59   : > { %234 = vst [vmem:[%s213_s30] sm:$0xff] %v230_v0  ;;  %237 = vst [vmem:[%s213_s30 + $0x8] sm:$0xff] %v230_v0  ;;  %s282_s20 = sshll.u32 %s213_s30, 4  ;;  %v253_v4 = vmul.f32 %v244_v2, %v244_v2  ;;  %v263_v5 = vmul.f32 %v244_v2, %v231_v1  ;;  %s816_s28 = scalar_lea.hbm %s869_s2, %s402_s19  ;;  %s818_s20 = int_to_ptr.vmem [resolvable:$true] %s282_s20 }
  0x5a   : > { %240 = vst [vmem:[%s213_s30 + $0x10] sm:$0xff] %v231_v1  ;;  %243 = vst [vmem:[%s213_s30 + $0x18] sm:$0xff] %v231_v1  ;;  %s536_s29 = scalar_lea.vmem %s818_s20, 1152  ;;  %s540_s26 = sshll.u32 %s626_s25, 4  ;;  %s541_s26 = int_to_ptr.vmem [resolvable:$false] %s540_s26 }
  0x5b   : > { %252 = vst [vmem:[%s213_s30 + $0x28] sm:$0xff] %v231_v1  ;;  %248 = vst [vmem:[%s213_s30 + $0x20] sm:$0xff] %v244_v2  ;;  %p537_p8 = scmp.ne.s32.totalorder %s818_s20, %s536_s29  ;;  %s542_s3 = scalar_lea.vmem %s541_s26, 2304 }
  0x5c   : > { %262 = vst [vmem:[%s213_s30 + $0x38] sm:$0xff] %v258_v3  ;;  %257 = vst [vmem:[%s213_s30 + $0x30] sm:$0xff] %v253_v4  ;;  %p543_p10 = scmp.lt.s32.totalorder %s818_s20, %s541_s26  ;;  %p544_p12 = scmp.lt.s32.totalorder %s542_s3, %s536_s29 }
  0x5d   : > { %267 = vst [vmem:[%s213_s30 + $0x40] sm:$0xff] %v263_v5  ;;  %p538_p7 = pnand %p537_p8, %p882_p0 }
  0x5e   : > { %p545_p1 = por %p544_p12, %p543_p10 }
  0x5f   : > { %p539_p4 = pneg %p538_p7 }
  0x61   : > { %p546_p2 = pnand %p545_p1, %p539_p4 }
  0x63   : > { %549 = shalt.err (!%p546_p2)
}
  0x64   : > { %s550_s8 = scalar_lea.hbm %s816_s28, 1152  ;;  %s554_s6 = scalar_lea.hbm %s869_s2, 2304 }
  0x65   : > { %p551_p9 = scmp.ne.s32.totalorder %s816_s28, %s550_s8  ;;  %p555_p6 = scmp.lt.u32.totalorder %s816_s28, %s869_s2 }
  0x66   : > { %p556_p13 = scmp.lt.u32.totalorder %s554_s6, %s550_s8  ;;  %p558_p8 = scmp.lt.u32.totalorder %s550_s8, %s816_s28 }
  0x67   : > { %p552_p11 = pnand %p551_p9, %p882_p0 }
  0x68   : > { %p557_p5 = por %p556_p13, %p555_p6 }
  0x69   : > { %p553_p3 = pneg %p552_p11 }
  0x6a   : > { %p559_p7 = por %p558_p8, %p557_p5 }
  0x6c   : > { %p560_p4 = pnand %p559_p7, %p553_p3 }
  0x6e   : > { %563 = shalt.err (!%p560_p4)
}
  0x6f   : > { %s627_s7 = smov 128   ;;  %s628_s19 = smov 8  }
  0x70   : > { %408 = dma.vmem_to_hbm [thread:$0]  (%p882_p0), %s818_s20, 1152, %s816_s28, %s269_s12, %s627_s7, %s627_s7, %s628_s19  }
  0x71 PF: > { %s297_s30 = sand.u32 1, %s602_s9   ;;  %p883_p10 = scmp.ne.s32.totalorder %s875_s24, 0 }
  0x72   : > { %p884_p12 = scmp.ge.s32.totalorder %s622_s14, 2  ;;  %s298_s21 = scalar_lea.sflag [#allocation4], %s297_s30 }
  0x74   : > { %p418_p1 = pnand %p884_p12, %p883_p10 }
  0x76   : > { %597 = dma.done.wait (!%p418_p1), %s298_s21, 1152  }
  0x77   : > { %599 = vsyncadd (!%p418_p1), %s298_s21, 4294966144  ;;  %s21_s14 = sadd.s32 1, %s622_s14   ;;  %s885_s9 = smov %s606_s10 }
  0x78   : > { %p18_p2 = scmp.ge.s32.totalorder %s21_s14, 4   ;;  %s886_s10 = smov %s610_s11 }
  0x79   : > { %s887_s11 = smov %s700_s23  ;;  %s888_s12 = smov %s618_s13 }
  0x7a   : > { %s889_s13 = smov %s891_s17  ;;  %20 = sbr.rel (!%p18_p2) target bundleno = 8 (0x8), region = 90 }
  0x81   :  { %303 = vsyncpa [#allocation3], 1 }
  0x82   :  { %305 = vsyncpa [#allocation3 + $0x1], 1 }
  0x83   :  { %306 = vsyncpa [#allocation6], 1 }
  0x84   :  { %308 = vsyncpa [#allocation6 + $0x1], 1 }
  0x85   :  { %309 = vsyncpa [#allocation4], 1 }
  0x86   :  { %311 = vsyncpa [#allocation4 + $0x1], 1 }

</bundles_post_ra>
